<compile_context>
chip_gen: v7x
topology: tpu7x:2x2x1
jax: 0.10.0
libtpu: 0.0.40
codegen_flags: <defaults>
</compile_context>

<pallas_src>
import functools

import jax
import jax.numpy as jnp
from jax.experimental import pallas as pl
from jax.experimental.pallas import tpu as pltpu


def _round_up(x, m):
    return ((x + m - 1) // m) * m


def _cdiv(a, b):
    return -(-a // b)


def _vmem_limit_bytes():
    # Raise the scoped VMEM limit (defaults 16 MiB v5e / 32 MiB v6e+v7x) so the
    # larger tiles get full double-buffering.  Leave ~25% headroom for
    # compiler-internal scratch; tile budgets below stay well under this.
    try:
        cap = pltpu.get_tpu_info().vmem_capacity_bytes
    except Exception:
        cap = 64 << 20
    return int(min(cap * 3 // 4, 96 << 20))


def prepare_reward_weight(weight, compute_dtype=jnp.bfloat16):
    """One-time weight prep (do at module init, NOT per forward call).

    Takes the PyTorch nn.Linear weight in [output_dim, input_dim] layout and
    returns it transposed to the MXU-native [K, N] layout, zero-padded so both
    dims are multiples of 128 (lane-dense), cast to the compute dtype.
    """
    N, K = weight.shape
    Kp, Np = _round_up(K, 128), _round_up(N, 128)
    w_kn = jnp.asarray(weight).T  # [K, N]
    if (Kp, Np) != (K, N):
        w_kn = jnp.pad(w_kn, ((0, Kp - K), (0, Np - N)))
    return w_kn.astype(compute_dtype)


def _reward_kernel_resident_w(x_ref, w_ref, o_ref, acc_ref, *, tk):
    # x_ref: (tm, tk) bf16 activation tile
    # w_ref: (KP, Np) bf16 weight, resident in VMEM (fetched once)
    # o_ref: (tm, Np) output tile (lane-dense)
    k = pl.program_id(1)

    @pl.when(k == 0)
    def _():
        acc_ref[...] = jnp.zeros_like(acc_ref)

    start = pl.multiple_of(k * tk, tk)
    acc_ref[...] += jnp.dot(
        x_ref[...], w_ref[pl.ds(start, tk), :],
        preferred_element_type=jnp.float32,
    )

    @pl.when(k == pl.num_programs(1) - 1)
    def _():
        o_ref[...] = acc_ref[...].astype(o_ref.dtype)


def _reward_kernel_tiled(x_ref, w_ref, o_ref, acc_ref):
    # x_ref: (tm, tk), w_ref: (tk, tn) [K, N] layout -> plain MXU contraction.
    k = pl.program_id(2)

    @pl.when(k == 0)
    def _():
        acc_ref[...] = jnp.zeros_like(acc_ref)

    acc_ref[...] += jnp.dot(
        x_ref[...], w_ref[...], preferred_element_type=jnp.float32
    )

    @pl.when(k == pl.num_programs(2) - 1)
    def _():
        o_ref[...] = acc_ref[...].astype(o_ref.dtype)


@functools.partial(
    jax.jit,
    static_argnames=("output_dim", "tm", "tn", "tk", "compute_dtype",
                     "resident_weight_bytes", "x_buffer_count",
                     "allow_fast_path"),
)
def reward_func_forward(x, w_kn, output_dim, *, tm=512, tn=512, tk=1024,
                        compute_dtype=jnp.bfloat16,
                        resident_weight_bytes=4 << 20,
                        x_buffer_count=2,
                        allow_fast_path=True):
    """Forward pass of RewardFunc: Dropout(p=0.0)(Linear(bias=False)(x)).

    x:     [B, input_dim]        (any float dtype; cast to compute_dtype)
    w_kn:  [Kp, Np]              output of prepare_reward_weight (one-time)
    returns [B, output_dim] in x.dtype
    """
    B, K = x.shape
    Kp128, Np = w_kn.shape
    assert Kp128 >= K and Kp128 % 128 == 0 and Np % 128 == 0
    assert output_dim <= Np
    out_dtype = x.dtype

    # bf16 operands / f32 accumulate. Callers holding bf16 x skip this cast.
    xc = x if x.dtype == compute_dtype else x.astype(compute_dtype)
    w = w_kn if w_kn.dtype == compute_dtype else w_kn.astype(compute_dtype)
    itemsize = jnp.dtype(compute_dtype).itemsize
    out_itemsize = jnp.dtype(out_dtype).itemsize

    # ---- tile selection ---------------------------------------------------
    Mb = _round_up(B, 8)
    tm = min(tm, Mb)
    tk = min(tk, Kp128)

    # Reward heads: small N, whole padded weight fits VMEM -> keep it resident.
    resident = Kp128 * Np * itemsize <= resident_weight_bytes
    tn = Np if resident else min(tn, Np)

    # v7x has 2 TensorCores; make sure the parallel grid has >= 2 steps when
    # possible (neutral on 1-TC v5e/v6e).
    if _cdiv(Mb, tm) * _cdiv(Np, tn) < 2 and Mb >= 16:
        tm = min(tm, _round_up((Mb + 1) // 2, 8))

    Mp = _round_up(B, tm)
    KP = _round_up(Kp128, tk)
    NP = _round_up(Np, tn)

    # ---- tiny-problem fast path -------------------------------------------
    total_steps = (Mp // tm) * (NP // tn) * (KP // tk)
    if allow_fast_path and total_steps == 1:
        y = jnp.dot(xc, w[:K, :output_dim], preferred_element_type=jnp.float32)
        return y.astype(out_dtype)

    # ---- padding (skipped entirely when already aligned) -------------------
    # TODO(synk): unaligned tails could be handled with a masked last tile
    # in-kernel instead of materializing a padded copy of x.
    if (Mp, KP) != (B, K):
        xc = jnp.pad(xc, ((0, Mp - B), (0, KP - K)))
    if (KP, NP) != (Kp128, Np):
        w = jnp.pad(w, ((0, KP - Kp128), (0, NP - Np)))

    vmem_limit = _vmem_limit_bytes()

    x_spec_kwargs = {}
    if x_buffer_count != 2:
        # Bump if a trace shows exposed DMA on the x operand (skinny-N case).
        x_spec_kwargs["pipeline_mode"] = pl.Buffered(x_buffer_count)

    if resident:
        grid = (Mp // tm, KP // tk)
        out_padded = pl.pallas_call(
            functools.partial(_reward_kernel_resident_w, tk=tk),
            out_shape=jax.ShapeDtypeStruct((Mp, Np), out_dtype),
            grid_spec=pltpu.PrefetchScalarGridSpec(
                num_scalar_prefetch=0,
                grid=grid,
                in_specs=[
                    pl.BlockSpec((tm, tk), lambda i, k: (i, k),
                                 **x_spec_kwargs),
                    # Constant block index -> weight DMA'd from HBM once,
                    # stays resident across all M tiles.
                    pl.BlockSpec((KP, Np), lambda i, k: (0, 0)),
                ],
                out_specs=pl.BlockSpec((tm, Np), lambda i, k: (i, 0)),
                scratch_shapes=[pltpu.VMEM((tm, Np), jnp.float32)],
            ),
            compiler_params=pltpu.CompilerParams(
                dimension_semantics=("parallel", "arbitrary"),
                vmem_limit_bytes=vmem_limit,
            ),
            cost_estimate=pl.CostEstimate(
                flops=2 * Mp * Np * KP,
                bytes_accessed=itemsize * (Mp * KP + KP * Np)
                + out_itemsize * Mp * Np,
                transcendentals=0,
            ),
        )(xc, w)
    else:
        grid = (Mp // tm, NP // tn, KP // tk)
        out_padded = pl.pallas_call(
            _reward_kernel_tiled,
            out_shape=jax.ShapeDtypeStruct((Mp, NP), out_dtype),
            grid_spec=pltpu.PrefetchScalarGridSpec(
                num_scalar_prefetch=0,
                grid=grid,
                in_specs=[
                    pl.BlockSpec((tm, tk), lambda i, j, k: (i, k),
                                 **x_spec_kwargs),
                    pl.BlockSpec((tk, tn), lambda i, j, k: (k, j)),
                ],
                out_specs=pl.BlockSpec((tm, tn), lambda i, j, k: (i, j)),
                scratch_shapes=[pltpu.VMEM((tm, tn), jnp.float32)],
            ),
            compiler_params=pltpu.CompilerParams(
                dimension_semantics=("parallel", "parallel", "arbitrary"),
                vmem_limit_bytes=vmem_limit,
            ),
            cost_estimate=pl.CostEstimate(
                flops=2 * Mp * NP * KP,
                # x is re-fetched once per N tile, weight once per M tile.
                bytes_accessed=itemsize * (Mp * KP * (NP // tn)
                                           + KP * NP * (Mp // tm))
                + out_itemsize * Mp * NP,
                transcendentals=0,
            ),
        )(xc, w)

    # Dropout(p=0.0) is the identity; slice the padding back off.
    return out_padded[:B, :output_dim]


if __name__ == "__main__":
    # Small shapes consistent with the module: batch=8, input_dim=32, output_dim=16
    B, input_dim, output_dim = 8, 32, 16

    key = jax.random.PRNGKey(0)
    k_x, k_w = jax.random.split(key)

    x = jax.random.normal(k_x, (B, input_dim), dtype=jnp.float32)
    # init_weights_with_norm_one: normal(mean=0, std=0.1), no bias
    weight = 0.1 * jax.random.normal(k_w, (output_dim, input_dim), dtype=jnp.float32)

    # One-time weight prep ([out,in] torch layout -> padded [K,N] bf16).
    w_kn = prepare_reward_weight(weight)

    # Force the Pallas path (the tiny demo grid would otherwise take the
    # jnp.dot fast path) -> exercises the resident-weight kernel.
    y = reward_func_forward(x, w_kn, output_dim=output_dim, allow_fast_path=False)
    jax.block_until_ready(y)

    y_ref = x @ weight.T
    assert y.shape == (B, output_dim)
    assert jnp.allclose(y, y_ref, atol=5e-2, rtol=5e-2), float(
        jnp.max(jnp.abs(y - y_ref)))

    # Also exercise the fully tiled (M, N, K) variant (resident path disabled)
    # with multi-step M and K grid axes, still at small shapes.
    B2, in2, out2 = 64, 256, 48
    x2 = jax.random.normal(jax.random.PRNGKey(1), (B2, in2), dtype=jnp.float32)
    w2 = 0.1 * jax.random.normal(jax.random.PRNGKey(2), (out2, in2),
                                 dtype=jnp.float32)
    w2_kn = prepare_reward_weight(w2)
    y2 = reward_func_forward(x2, w2_kn, output_dim=out2, tm=32, tn=128, tk=128,
                             resident_weight_bytes=0, allow_fast_path=False)
    jax.block_until_ready(y2)
    y2_ref = x2 @ w2.T
    assert y2.shape == (B2, out2)
    assert jnp.allclose(y2, y2_ref, atol=5e-2, rtol=5e-2), float(
        jnp.max(jnp.abs(y2 - y2_ref)))

    print("KERNEL_OK")
</pallas_src>

<mosaic_0001>
module attributes {stable_mosaic.version = 11 : i64} {
  func.func @_reward_kernel_resident_w(%arg0: i32, %arg1: i32, %arg2: memref<8x128xbf16, #tpu.memory_space<vmem>>, %arg3: memref<128x128xbf16, #tpu.memory_space<vmem>>, %arg4: memref<8x128xf32, #tpu.memory_space<vmem>>, %arg5: memref<8x128xf32, #tpu.memory_space<vmem>>) attributes {dimension_semantics = [#tpu.dimension_semantics<parallel>, #tpu.dimension_semantics<arbitrary>], iteration_bounds = array<i64: 1, 1>, scalar_prefetch = 0 : i64, scratch_operands = 1 : i64, tpu.core_type = #tpu.core_type<tc>, window_params = [{transform_indices = @transform_0, window_bounds = array<i64: 8, 128>}, {pipeline_mode = #tpu.pipeline_mode<synchronous>, transform_indices = @transform_1, window_bounds = array<i64: 128, 128>}, {transform_indices = @transform_2, window_bounds = array<i64: 8, 128>}]} {
    %c0_i32 = arith.constant 0 : i32
    %0 = arith.cmpi eq, %arg1, %c0_i32 : i32
    %1 = arith.extui %0 : i1 to i32
    %c0_i32_0 = arith.constant 0 : i32
    %2 = arith.cmpi ne, %1, %c0_i32_0 : i32
    scf.if %2 {
      %cst_9 = arith.constant 0.000000e+00 : f32
      %15 = vector.broadcast %cst_9 : f32 to vector<8x128xf32>
      %c0_10 = arith.constant 0 : index
      %c0_11 = arith.constant 0 : index
      %16 = vector.load %arg5[%c0_10, %c0_11] : memref<8x128xf32, #tpu.memory_space<vmem>>, vector<8x128xf32>
      tpu.vector_store %arg5[%c0_10, %c0_11], %15 {strides = array<i32>} : memref<8x128xf32, #tpu.memory_space<vmem>>, vector<8x128xf32>,
    } else {
    }
    %c128_i32 = arith.constant 128 : i32
    %3 = arith.muli %arg1, %c128_i32 : i32
    %4 = tpu.assume_multiple %3, 128 : i32
    %c0 = arith.constant 0 : index
    %c0_1 = arith.constant 0 : index
    %5 = vector.load %arg5[%c0, %c0_1] : memref<8x128xf32, #tpu.memory_space<vmem>>, vector<8x128xf32>
    %c0_2 = arith.constant 0 : index
    %c0_3 = arith.constant 0 : index
    %6 = vector.load %arg2[%c0_2, %c0_3] : memref<8x128xbf16, #tpu.memory_space<vmem>>, vector<8x128xbf16>
    %7 = arith.index_cast %4 : i32 to index
    %c0_4 = arith.constant 0 : index
    %8 = vector.load %arg3[%7, %c0_4] : memref<128x128xbf16, #tpu.memory_space<vmem>>, vector<128x128xbf16>
    %cst = arith.constant dense<0.000000e+00> : vector<8x128xf32>
    %9 = tpu.matmul %6, %8, %cst {dimension_numbers = #tpu.dot_dimension_numbers<[1], [0], [0], [1], [0, 0, 1, 1], [], []>} : vector<8x128xbf16>, vector<128x128xbf16>, vector<8x128xf32> -> vector<8x128xf32>
    %10 = arith.addf %5, %9 : vector<8x128xf32>
    %c0_5 = arith.constant 0 : index
    %c0_6 = arith.constant 0 : index
    %11 = vector.load %arg5[%c0_5, %c0_6] : memref<8x128xf32, #tpu.memory_space<vmem>>, vector<8x128xf32>
    tpu.vector_store %arg5[%c0_5, %c0_6], %10 {strides = array<i32>} : memref<8x128xf32, #tpu.memory_space<vmem>>, vector<8x128xf32>,
    %c0_i32_7 = arith.constant 0 : i32
    %12 = arith.cmpi eq, %arg1, %c0_i32_7 : i32
    %13 = arith.extui %12 : i1 to i32
    %c0_i32_8 = arith.constant 0 : i32
    %14 = arith.cmpi ne, %13, %c0_i32_8 : i32
    scf.if %14 {
      %c0_9 = arith.constant 0 : index
      %c0_10 = arith.constant 0 : index
      %15 = vector.load %arg5[%c0_9, %c0_10] : memref<8x128xf32, #tpu.memory_space<vmem>>, vector<8x128xf32>
      %c0_11 = arith.constant 0 : index
      %c0_12 = arith.constant 0 : index
      %16 = vector.load %arg4[%c0_11, %c0_12] : memref<8x128xf32, #tpu.memory_space<vmem>>, vector<8x128xf32>
      tpu.vector_store %arg4[%c0_11, %c0_12], %15 {strides = array<i32>} : memref<8x128xf32, #tpu.memory_space<vmem>>, vector<8x128xf32>,
    } else {
    }
    return
  }
  func.func @transform_0(%arg0: i32, %arg1: i32) -> (i32, i32) {
    %c0_i32 = arith.constant 0 : i32
    return %arg0, %arg1 : i32, i32
  }
  func.func @transform_1(%arg0: i32, %arg1: i32) -> (i32, i32) {
    %c0_i32 = arith.constant 0 : i32
    %c0_i32_0 = arith.constant 0 : i32
    %c0_i32_1 = arith.constant 0 : i32
    return %c0_i32, %c0_i32_0 : i32, i32
  }
  func.func @transform_2(%arg0: i32, %arg1: i32) -> (i32, i32) {
    %c0_i32 = arith.constant 0 : i32
    %c0_i32_0 = arith.constant 0 : i32
    return %arg0, %c0_i32 : i32, i32
  }
}

</mosaic_0001>

<bundles_post_ra>
// kernel: reward_func_forward.1
= control target key start
LH: loop header
LB: loop body
LE: loop exit
PB: predicated region body
PF: predicated region fallthrough
CT: control target
= control target key end

     0   :  { %7 = vsyncpa [#allocation4], 0  ;;  %s314_s0 = inlined_call_operand.vmem [shape: bf16[8,128], index: 0, kind: input, shape index: {}]   ;;  %s315_s1 = inlined_call_operand.hbm [shape: bf16[128,128], index: 1, kind: input, shape index: {}]   ;;  %s316_s2 = inlined_call_operand.hbm [shape: f32[8,128], index: 2, kind: output, shape index: {}]  }
   0x1   :  { %8 = vsyncpa [#allocation5], 0  ;;  %s266_s9 = smov [#allocation3]   ;;  %s218_s13 = scalar_lea.hbm %s315_s1, 1024 }
   0x2   :  { %s16_s10 = sshll.u32 %s266_s9, 4  ;;  %p219_p0 = scmp.ne.s32.totalorder %s315_s1, %s218_s13  ;;  %s17_s10 = int_to_ptr.vmem [resolvable:$true] %s16_s10 }
   0x3   :  { %p222_p1 = scmp.lt.u32.totalorder %s218_s13, %s315_s1 }
   0x5   :  { %p224_p2 = pnand %p222_p1, %p219_p0 }
   0x7   :  { %227 = shalt.err (!%p224_p2)
}
   0x8   :  { %s228_s18 = scalar_lea.vmem %s17_s10, 1024  ;;  %p233_p4 = scmp.lt.s32.totalorder %s17_s10, %s17_s10 }
   0x9   :  { %p229_p3 = scmp.ne.s32.totalorder %s17_s10, %s228_s18  ;;  %p234_p5 = scmp.lt.s32.totalorder %s228_s18, %s228_s18 }
   0xb   :  { %p235_p6 = por %p234_p5, %p233_p4 }
   0xd   :  { %p236_p7 = pnand %p235_p6, %p229_p3 }
   0xf   :  { %239 = shalt.err (!%p236_p7)
}
  0x10   :  { %s267_s19 = smov 64   ;;  %s268_s20 = smov 4  }
  0x11   :  { %22 = dma.hbm_to_vmem [thread:$0]  %s315_s1, 1024, %s17_s10, [#allocation4], %s267_s19, %s267_s19, %s268_s20  }
  0x12   :  { %262 = dma.done.wait [#allocation4], 1024  }
  0x13   :  { %263 = vsyncadd [#allocation4], 4294966272  ;;  %v269_v0 = vmov 0.0   ;;  %vm270_vm0 = vmmov 0   ;;  %v210_v1 = vld [vmem:[#allocation3] sm:$0xff]   ;;  %v211_v2 = vld [vmem:[#allocation3 + $0x8] sm:$0xff]  }
  0x14   :  { %184 = vmatprep.subr.bf16.mxu0 %v269_v0  ;;  %200 = vmatprep.mubr.msk.bf16.mxu0 %vm270_vm0, %v269_v0  ;;  %v212_v3 = vld [vmem:[#allocation3 + $0x10] sm:$0xff]   ;;  %v213_v4 = vld [vmem:[#allocation3 + $0x18] sm:$0xff]   ;;  %v214_v5 = vld [vmem:[#allocation3 + $0x20] sm:$0xff]   ;;  %s271_s24 = smov [#allocation6]  }
  0x15   :  { %185 = vmatpush3.bf16.msra.mxu0 %v210_v1  ;;  %v215_v6 = vld [vmem:[#allocation3 + $0x28] sm:$0xff]   ;;  %v216_v7 = vld [vmem:[#allocation3 + $0x30] sm:$0xff]   ;;  %v217_v8 = vld [vmem:[#allocation3 + $0x38] sm:$0xff]   ;;  %s156_s25 = sshll.u32 %s271_s24, 4  ;;  %s157_s25 = int_to_ptr.vmem [resolvable:$true] %s156_s25 }
  0x16   :  { %186 = vmatprep.subr.bf16.mxu0 %v269_v0  ;;  %v34_v9 = vld [vmem:[%s314_s0] sm:$0xf]  ;;  %s240_s26 = scalar_lea.vmem %s157_s25, 128  ;;  %p245_p9 = scmp.lt.s32.totalorder %s157_s25, %s157_s25 }
  0x17   :  { %p241_p8 = scmp.ne.s32.totalorder %s157_s25, %s240_s26  ;;  %p246_p10 = scmp.lt.s32.totalorder %s240_s26, %s240_s26 }
  0x19   :  { %187 = vmatpush3.bf16.msra.mxu0 %v211_v2  ;;  %p247_p11 = por %p246_p10, %p245_p9 }
  0x1a   :  { %188 = vmatprep.subr.bf16.mxu0 %v269_v0 }
  0x1b   :  { %p248_p12 = pnand %p247_p11, %p241_p8 }
  0x1d   :  { %189 = vmatpush3.bf16.msra.mxu0 %v212_v3 }
  0x1e   :  { %190 = vmatprep.subr.bf16.mxu0 %v269_v0 }
  0x21   :  { %191 = vmatpush3.bf16.msra.mxu0 %v213_v4 }
  0x22   :  { %192 = vmatprep.subr.bf16.mxu0 %v269_v0 }
  0x25   :  { %193 = vmatpush3.bf16.msra.mxu0 %v214_v5 }
  0x26   :  { %194 = vmatprep.subr.bf16.mxu0 %v269_v0 }
  0x29   :  { %195 = vmatpush3.bf16.msra.mxu0 %v215_v6 }
  0x2a   :  { %196 = vmatprep.subr.bf16.mxu0 %v269_v0 }
  0x2d   :  { %197 = vmatpush3.bf16.msra.mxu0 %v216_v7 }
  0x2e   :  { %198 = vmatprep.subr.bf16.mxu0 %v269_v0 }
  0x31   :  { %199 = vmatpush3.bf16.msra.mxu0 %v217_v8 }
  0x34   :  { %201 = vmatmul.mubr.bf16.vlgmr.msra.gmra.mrb[0].mxu0 %v34_v9 }
 0x107   :  { %v137_v10 = vpop.f32.mrb[0].mxu0 }
 0x108   :  { %149 = vst [vmem:[#allocation6] sm:$0xff] %v137_v10  ;;  %v202_v11 = vpop.f32.mrb[1].mxu0 }
 0x109   :  { %v140_v12 = vpop.f32.mrb[2].mxu0 }
 0x10a   :  { %251 = shalt.err (!%p248_p12)
}
 0x10b   :  { %s252_s29 = scalar_lea.hbm %s316_s2, 128 }
 0x10c   :  { %p253_p13 = scmp.ne.s32.totalorder %s316_s2, %s252_s29  ;;  %p256_p0 = scmp.lt.u32.totalorder %s252_s29, %s316_s2 }
 0x10e   :  { %p258_p1 = pnand %p256_p0, %p253_p13 }
 0x110   :  { %261 = shalt.err (!%p258_p1)
}
 0x111   :  { %159 = dma.vmem_to_hbm [thread:$0]  %s157_s25, 128, %s316_s2, [#allocation5]   ;;  %v203_v13 = vpop.f32.mrb[3].mxu0 }
 0x112   :  { %264 = dma.done.wait [#allocation5], 128  }
 0x113   :  { %265 = vsyncadd [#allocation5], 4294967168 }
 0x114   :  { %163 = vsyncpa [#allocation4], 1 }
 0x115   :  { %164 = vsyncpa [#allocation5], 1 }

</bundles_post_ra>
